<compile_context>
chip_gen: v6e
topology: v6e:2x2x1
jax: 0.10.0
libtpu: 0.0.40
codegen_flags: <defaults>
</compile_context>

<pallas_src>
import jax
import jax.numpy as jnp
from jax.experimental import pallas as pl
from jax.experimental.pallas import tpu as pltpu

LANES = 128
SUBLANES = 8
# Total double-buffered VMEM budget for the two streamed inputs (~8 MiB):
# safely inside the default scoped VMEM on v5e (16 MiB) / v6e / v7x (32 MiB).
VMEM_INPUT_BUDGET = 8 * 1024 * 1024


def _cdiv(a, b):
    return -(-a // b)


def _round_up(v, m):
    return _cdiv(v, m) * m


def _num_tensorcores():
    """2 on megacore-style chips (v4 / v5p / v7x), else 1 (v5e / v6e)."""
    try:
        kind = jax.devices()[0].device_kind.lower()
    except Exception:
        return 1
    if "v7" in kind or "v4" in kind or "v5p" in kind:
        return 2
    return 1


def _make_kernel(from_logits, n_total, block_rows, blocks_per_core, needs_mask):
    sub_groups = block_rows // SUBLANES

    def kernel(x_ref, y_ref, part_ref):
        i = pl.program_id(1)

        @pl.when(i == 0)
        def _init():
            part_ref[...] = jnp.zeros_like(part_ref)

        y = y_ref[...].astype(jnp.float32)

        if from_logits:
            # Fused stable log-sigmoid: one exp + one log1p + one divide.
            z = x_ref[...].astype(jnp.float32)
            e = jnp.exp(-jnp.abs(z))
            lse = jnp.log1p(e)                       # softplus(-|z|)
            log_x = jnp.maximum(jnp.minimum(z, 0.0) - lse, -100.0)
            log_1mx = jnp.maximum(-jnp.maximum(z, 0.0) - lse, -100.0)
            r = 1.0 / (1.0 + e)
            x = jnp.where(z >= 0.0, r, e * r)        # sigmoid(z)
        else:
            x = x_ref[...].astype(jnp.float32)
            # torch binary_cross_entropy clamps the log terms at -100.
            log_x = jnp.maximum(jnp.log(x), -100.0)
            log_1mx = jnp.maximum(jnp.log(1.0 - x), -100.0)

        # y*log_x + (1-y)*log_1mx == log_1mx + y*(log_x - log_1mx)
        bce = -(log_1mx + y * (log_x - log_1mx))

        if needs_mask:
            # Zero the tail of the (possibly ragged / over-running) final block
            # based on the true element count; pad/garbage values (incl. NaN)
            # never reach the sums because jnp.where is a select.
            c = pl.program_id(0)
            start_row = (c * blocks_per_core + i) * block_rows
            row = start_row + jax.lax.broadcasted_iota(
                jnp.int32, (block_rows, LANES), 0)
            last_row = n_total // LANES
            rem = n_total % LANES
            valid = row < last_row
            if rem:
                lane = jax.lax.broadcasted_iota(
                    jnp.int32, (block_rows, LANES), 1)
                valid = valid | ((row == last_row) & (lane < rem))
            zero = jnp.float32(0.0)
            x = jnp.where(valid, x, zero)
            y = jnp.where(valid, y, zero)
            bce = jnp.where(valid, bce, zero)

        # Reduce only across groups of 8 sublanes: pure full-vreg VALU adds,
        # keeping (8, 128) lane/sublane-resident partials (no XLU, no masked
        # sub-vreg stores).  The final reduction happens in the wrapper.
        xr = x.reshape(sub_groups, SUBLANES, LANES)
        yr = y.reshape(sub_groups, SUBLANES, LANES)
        br = bce.reshape(sub_groups, SUBLANES, LANES)
        part_ref[0, 0] += jnp.sum(xr * yr, axis=0)   # intersection
        part_ref[0, 1] += jnp.sum(xr, axis=0)        # sum(inputs)
        part_ref[0, 2] += jnp.sum(yr, axis=0)        # sum(targets)
        part_ref[0, 3] += jnp.sum(br, axis=0)        # sum(BCE)

    return kernel


def dice_bce_loss(inputs, targets, smooth=0.1, from_logits=False):
    """Pallas implementation of DiceBCELoss.forward. Returns a scalar f32."""
    x = inputs.reshape(-1)
    y = targets.reshape(-1)
    n_total = x.shape[0]

    n_cores = _num_tensorcores()

    # View the flat arrays as (rows, 128).  No copy when the flat length is a
    # multiple of 128 and there is at least one full (8,128) tile; otherwise a
    # minimal pad (values are irrelevant thanks to the in-kernel mask).
    rows_view = _cdiv(n_total, LANES)
    rows_arr = max(rows_view, SUBLANES)
    n_arr = rows_arr * LANES
    if n_arr != n_total:
        # TODO(synk): only remaining wrapper copy; hit only for lane-unaligned
        # or tiny (<1024 elem) inputs. Large aligned inputs take the zero-copy path.
        x = jnp.pad(x, (0, n_arr - n_total))
        y = jnp.pad(y, (0, n_arr - n_total))
    x2 = x.reshape(rows_arr, LANES)
    y2 = y.reshape(rows_arr, LANES)

    # Tile size: ~8 MiB of double-buffered input VMEM, but keep >= 2 grid steps
    # per core so the DMA pipeline has something to overlap.
    bytes_per_elem = x2.dtype.itemsize + y2.dtype.itemsize
    max_rows = max(SUBLANES,
                   (VMEM_INPUT_BUDGET // (2 * LANES * bytes_per_elem))
                   // SUBLANES * SUBLANES)
    rows_per_core = _cdiv(rows_arr, n_cores)
    block_rows = min(max_rows, _round_up(_cdiv(rows_per_core, 2), SUBLANES))
    num_blocks = _cdiv(rows_arr, block_rows)
    blocks_per_core = _cdiv(num_blocks, n_cores)
    covered = n_cores * blocks_per_core * block_rows * LANES
    needs_mask = covered != n_total

    if n_cores * blocks_per_core == num_blocks:
        in_map = lambda c, i: (c * blocks_per_core + i, 0)
    else:
        # A (single) fully over-running grid step re-reads the last block;
        # its contribution is zeroed entirely by the in-kernel mask.
        last_block = num_blocks - 1
        in_map = lambda c, i: (jnp.minimum(c * blocks_per_core + i, last_block), 0)

    cost = pl.CostEstimate(
        flops=12 * covered,
        transcendentals=(3 if from_logits else 2) * covered,
        bytes_accessed=(x2.size * x2.dtype.itemsize
                        + y2.size * y2.dtype.itemsize
                        + n_cores * 4 * SUBLANES * LANES * 4),
    )

    partials = pl.pallas_call(
        _make_kernel(from_logits, n_total, block_rows, blocks_per_core,
                     needs_mask),
        out_shape=jax.ShapeDtypeStruct((n_cores, 4, SUBLANES, LANES),
                                       jnp.float32),
        grid_spec=pltpu.PrefetchScalarGridSpec(
            num_scalar_prefetch=0,
            grid=(n_cores, blocks_per_core),
            in_specs=[
                pl.BlockSpec((block_rows, LANES), in_map),
                pl.BlockSpec((block_rows, LANES), in_map),
            ],
            out_specs=pl.BlockSpec((1, 4, SUBLANES, LANES),
                                   lambda c, i: (c, 0, 0, 0)),
        ),
        compiler_params=pltpu.CompilerParams(
            dimension_semantics=("parallel", "arbitrary")),
        cost_estimate=cost,
    )(x2, y2)

    # Tiny epilogue: cross-core + cross-sublane + cross-lane combine and the
    # scalar loss math.
    sums = jnp.sum(partials, axis=(0, 2, 3))   # (4,)
    inter, sx, sy, sbce = sums[0], sums[1], sums[2], sums[3]
    smooth = jnp.float32(smooth)
    dice_loss = 1.0 - (2.0 * inter + smooth) / (sx + sy + smooth)
    bce_mean = sbce / jnp.float32(n_total)
    return (bce_mean + dice_loss).astype(jnp.float32)


def _reference(inputs, targets, smooth=0.1, from_logits=False):
    if from_logits:
        inputs = jax.nn.sigmoid(inputs)
    x = inputs.reshape(-1).astype(jnp.float32)
    y = targets.reshape(-1).astype(jnp.float32)
    inter = jnp.sum(x * y)
    dice = 1.0 - (2.0 * inter + smooth) / (jnp.sum(x) + jnp.sum(y) + smooth)
    bce = jnp.mean(-(y * jnp.maximum(jnp.log(x), -100.0)
                     + (1.0 - y) * jnp.maximum(jnp.log(1.0 - x), -100.0)))
    return bce + dice


if __name__ == "__main__":
    key = jax.random.PRNGKey(0)
    k1, k2 = jax.random.split(key)

    # Probabilities path (from_logits=False), tile-aligned shape.
    inputs = jax.random.uniform(k1, (2, 4, 16, 16), dtype=jnp.float32,
                                minval=0.01, maxval=0.99)
    targets = (jax.random.uniform(k2, (2, 4, 16, 16)) > 0.5).astype(jnp.float32)
    loss = jax.block_until_ready(dice_bce_loss(inputs, targets, smooth=0.1))
    ref = _reference(inputs, targets, smooth=0.1)
    assert jnp.allclose(loss, ref, rtol=1e-5, atol=1e-5), (loss, ref)

    # Fused-sigmoid (from_logits=True) path.
    logits = jax.random.normal(k1, (2, 4, 16, 16), dtype=jnp.float32)
    loss2 = jax.block_until_ready(
        dice_bce_loss(logits, targets, smooth=0.1, from_logits=True))
    ref2 = _reference(logits, targets, smooth=0.1, from_logits=True)
    assert jnp.allclose(loss2, ref2, rtol=1e-5, atol=1e-5), (loss2, ref2)

    # Lane-unaligned shape + from_logits: exercises the in-kernel tail mask
    # (previously a correctness bug when padded logits hit sigmoid(0)=0.5).
    k3, k4 = jax.random.split(k2)
    logits3 = jax.random.normal(k3, (3, 5, 7), dtype=jnp.float32)
    targets3 = (jax.random.uniform(k4, (3, 5, 7)) > 0.5).astype(jnp.float32)
    loss3 = jax.block_until_ready(
        dice_bce_loss(logits3, targets3, smooth=0.1, from_logits=True))
    ref3 = _reference(logits3, targets3, smooth=0.1, from_logits=True)
    assert jnp.allclose(loss3, ref3, rtol=1e-5, atol=1e-5), (loss3, ref3)

    # Lane-aligned but ragged-row shape: zero-copy path with a ragged final
    # block handled purely by the in-kernel mask.
    inputs4 = jax.random.uniform(k3, (2, 3, 16, 16), dtype=jnp.float32,
                                 minval=0.01, maxval=0.99)
    targets4 = (jax.random.uniform(k4, (2, 3, 16, 16)) > 0.5).astype(jnp.float32)
    loss4 = jax.block_until_ready(dice_bce_loss(inputs4, targets4, smooth=0.1))
    ref4 = _reference(inputs4, targets4, smooth=0.1)
    assert jnp.allclose(loss4, ref4, rtol=1e-5, atol=1e-5), (loss4, ref4)

    print("KERNEL_OK")
</pallas_src>

<mosaic_0001>
module attributes {stable_mosaic.version = 11 : i64} {
  func.func @kernel(%arg0: i32, %arg1: i32, %arg2: memref<8x128xf32, #tpu.memory_space<vmem>>, %arg3: memref<8x128xf32, #tpu.memory_space<vmem>>, %arg4: memref<1x4x8x128xf32, #tpu.memory_space<vmem>>) attributes {dimension_semantics = [#tpu.dimension_semantics<parallel>, #tpu.dimension_semantics<arbitrary>], iteration_bounds = array<i64: 1, 2>, scalar_prefetch = 0 : i64, scratch_operands = 0 : i64, tpu.core_type = #tpu.core_type<tc>, window_params = [{transform_indices = @transform_0, window_bounds = array<i64: 8, 128>}, {transform_indices = @transform_1, window_bounds = array<i64: 8, 128>}, {transform_indices = @transform_2, window_bounds = array<i64: 1, 4, 8, 128>}]} {
    %c0_i32 = arith.constant 0 : i32
    %0 = arith.cmpi eq, %arg1, %c0_i32 : i32
    %1 = arith.extui %0 : i1 to i32
    %c0_i32_0 = arith.constant 0 : i32
    %2 = arith.cmpi ne, %1, %c0_i32_0 : i32
    scf.if %2 {
      %cst_40 = arith.constant 0.000000e+00 : f32
      %50 = vector.broadcast %cst_40 : f32 to vector<1x4x8x128xf32>
      %c0_41 = arith.constant 0 : index
      %c0_42 = arith.constant 0 : index
      %c0_43 = arith.constant 0 : index
      %c0_44 = arith.constant 0 : index
      %51 = vector.load %arg4[%c0_41, %c0_42, %c0_43, %c0_44] : memref<1x4x8x128xf32, #tpu.memory_space<vmem>>, vector<1x4x8x128xf32>
      tpu.vector_store %arg4[%c0_41, %c0_42, %c0_43, %c0_44], %50 {strides = array<i32>} : memref<1x4x8x128xf32, #tpu.memory_space<vmem>>, vector<1x4x8x128xf32>,
    } else {
    }
    %c0 = arith.constant 0 : index
    %c0_1 = arith.constant 0 : index
    %3 = vector.load %arg3[%c0, %c0_1] : memref<8x128xf32, #tpu.memory_space<vmem>>, vector<8x128xf32>
    %c0_2 = arith.constant 0 : index
    %c0_3 = arith.constant 0 : index
    %4 = vector.load %arg2[%c0_2, %c0_3] : memref<8x128xf32, #tpu.memory_space<vmem>>, vector<8x128xf32>
    %5 = math.log %4 : vector<8x128xf32>
    %cst = arith.constant -1.000000e+02 : f32
    %6 = vector.broadcast %cst : f32 to vector<8x128xf32>
    %7 = arith.maximumf %5, %6 : vector<8x128xf32>
    %cst_4 = arith.constant 1.000000e+00 : f32
    %8 = vector.broadcast %cst_4 : f32 to vector<8x128xf32>
    %9 = arith.subf %8, %4 : vector<8x128xf32>
    %10 = math.log %9 : vector<8x128xf32>
    %cst_5 = arith.constant -1.000000e+02 : f32
    %11 = vector.broadcast %cst_5 : f32 to vector<8x128xf32>
    %12 = arith.maximumf %10, %11 : vector<8x128xf32>
    %13 = arith.subf %7, %12 : vector<8x128xf32>
    %14 = arith.mulf %3, %13 : vector<8x128xf32>
    %15 = arith.addf %12, %14 : vector<8x128xf32>
    %cst_6 = arith.constant 0.000000e+00 : f32
    %16 = vector.broadcast %cst_6 : f32 to vector<8x128xf32>
    %17 = arith.subf %16, %15 : vector<8x128xf32>
    %18 = vector.shape_cast %4 : vector<8x128xf32> to vector<1x8x128xf32>
    %19 = vector.shape_cast %3 : vector<8x128xf32> to vector<1x8x128xf32>
    %20 = vector.shape_cast %17 : vector<8x128xf32> to vector<1x8x128xf32>
    %c0_7 = arith.constant 0 : index
    %c0_8 = arith.constant 0 : index
    %c0_9 = arith.constant 0 : index
    %c0_10 = arith.constant 0 : index
    %21 = vector.load %arg4[%c0_7, %c0_8, %c0_9, %c0_10] : memref<1x4x8x128xf32, #tpu.memory_space<vmem>>, vector<1x1x8x128xf32>
    %22 = vector.shape_cast %21 : vector<1x1x8x128xf32> to vector<8x128xf32>
    %23 = arith.mulf %18, %19 : vector<1x8x128xf32>
    %cst_11 = arith.constant dense<0.000000e+00> : vector<8x128xf32>
    %24 = vector.multi_reduction <add>, %23, %cst_11 [0] : vector<1x8x128xf32> to vector<8x128xf32>
    %25 = arith.addf %22, %24 : vector<8x128xf32>
    %c0_12 = arith.constant 0 : index
    %c0_13 = arith.constant 0 : index
    %c0_14 = arith.constant 0 : index
    %c0_15 = arith.constant 0 : index
    %26 = vector.load %arg4[%c0_12, %c0_13, %c0_14, %c0_15] : memref<1x4x8x128xf32, #tpu.memory_space<vmem>>, vector<1x1x8x128xf32>
    %27 = vector.shape_cast %26 : vector<1x1x8x128xf32> to vector<8x128xf32>
    %28 = vector.shape_cast %25 : vector<8x128xf32> to vector<1x1x8x128xf32>
    tpu.vector_store %arg4[%c0_12, %c0_13, %c0_14, %c0_15], %28 {strides = array<i32>} : memref<1x4x8x128xf32, #tpu.memory_space<vmem>>, vector<1x1x8x128xf32>,
    %c0_16 = arith.constant 0 : index
    %c1 = arith.constant 1 : index
    %c0_17 = arith.constant 0 : index
    %c0_18 = arith.constant 0 : index
    %29 = vector.load %arg4[%c0_16, %c1, %c0_17, %c0_18] : memref<1x4x8x128xf32, #tpu.memory_space<vmem>>, vector<1x1x8x128xf32>
    %30 = vector.shape_cast %29 : vector<1x1x8x128xf32> to vector<8x128xf32>
    %cst_19 = arith.constant dense<0.000000e+00> : vector<8x128xf32>
    %31 = vector.multi_reduction <add>, %18, %cst_19 [0] : vector<1x8x128xf32> to vector<8x128xf32>
    %32 = arith.addf %30, %31 : vector<8x128xf32>
    %c0_20 = arith.constant 0 : index
    %c1_21 = arith.constant 1 : index
    %c0_22 = arith.constant 0 : index
    %c0_23 = arith.constant 0 : index
    %33 = vector.load %arg4[%c0_20, %c1_21, %c0_22, %c0_23] : memref<1x4x8x128xf32, #tpu.memory_space<vmem>>, vector<1x1x8x128xf32>
    %34 = vector.shape_cast %33 : vector<1x1x8x128xf32> to vector<8x128xf32>
    %35 = vector.shape_cast %32 : vector<8x128xf32> to vector<1x1x8x128xf32>
    tpu.vector_store %arg4[%c0_20, %c1_21, %c0_22, %c0_23], %35 {strides = array<i32>} : memref<1x4x8x128xf32, #tpu.memory_space<vmem>>, vector<1x1x8x128xf32>,
    %c0_24 = arith.constant 0 : index
    %c2 = arith.constant 2 : index
    %c0_25 = arith.constant 0 : index
    %c0_26 = arith.constant 0 : index
    %36 = vector.load %arg4[%c0_24, %c2, %c0_25, %c0_26] : memref<1x4x8x128xf32, #tpu.memory_space<vmem>>, vector<1x1x8x128xf32>
    %37 = vector.shape_cast %36 : vector<1x1x8x128xf32> to vector<8x128xf32>
    %cst_27 = arith.constant dense<0.000000e+00> : vector<8x128xf32>
    %38 = vector.multi_reduction <add>, %19, %cst_27 [0] : vector<1x8x128xf32> to vector<8x128xf32>
    %39 = arith.addf %37, %38 : vector<8x128xf32>
    %c0_28 = arith.constant 0 : index
    %c2_29 = arith.constant 2 : index
    %c0_30 = arith.constant 0 : index
    %c0_31 = arith.constant 0 : index
    %40 = vector.load %arg4[%c0_28, %c2_29, %c0_30, %c0_31] : memref<1x4x8x128xf32, #tpu.memory_space<vmem>>, vector<1x1x8x128xf32>
    %41 = vector.shape_cast %40 : vector<1x1x8x128xf32> to vector<8x128xf32>
    %42 = vector.shape_cast %39 : vector<8x128xf32> to vector<1x1x8x128xf32>
    tpu.vector_store %arg4[%c0_28, %c2_29, %c0_30, %c0_31], %42 {strides = array<i32>} : memref<1x4x8x128xf32, #tpu.memory_space<vmem>>, vector<1x1x8x128xf32>,
    %c0_32 = arith.constant 0 : index
    %c3 = arith.constant 3 : index
    %c0_33 = arith.constant 0 : index
    %c0_34 = arith.constant 0 : index
    %43 = vector.load %arg4[%c0_32, %c3, %c0_33, %c0_34] : memref<1x4x8x128xf32, #tpu.memory_space<vmem>>, vector<1x1x8x128xf32>
    %44 = vector.shape_cast %43 : vector<1x1x8x128xf32> to vector<8x128xf32>
    %cst_35 = arith.constant dense<0.000000e+00> : vector<8x128xf32>
    %45 = vector.multi_reduction <add>, %20, %cst_35 [0] : vector<1x8x128xf32> to vector<8x128xf32>
    %46 = arith.addf %44, %45 : vector<8x128xf32>
    %c0_36 = arith.constant 0 : index
    %c3_37 = arith.constant 3 : index
    %c0_38 = arith.constant 0 : index
    %c0_39 = arith.constant 0 : index
    %47 = vector.load %arg4[%c0_36, %c3_37, %c0_38, %c0_39] : memref<1x4x8x128xf32, #tpu.memory_space<vmem>>, vector<1x1x8x128xf32>
    %48 = vector.shape_cast %47 : vector<1x1x8x128xf32> to vector<8x128xf32>
    %49 = vector.shape_cast %46 : vector<8x128xf32> to vector<1x1x8x128xf32>
    tpu.vector_store %arg4[%c0_36, %c3_37, %c0_38, %c0_39], %49 {strides = array<i32>} : memref<1x4x8x128xf32, #tpu.memory_space<vmem>>, vector<1x1x8x128xf32>,
    return
  }
  func.func @transform_0(%arg0: i32, %arg1: i32) -> (i32, i32) {
    %c2_i32 = arith.constant 2 : i32
    %0 = arith.muli %arg0, %c2_i32 : i32
    %1 = arith.addi %0, %arg1 : i32
    %c0_i32 = arith.constant 0 : i32
    %c0_i32_0 = arith.constant 0 : i32
    return %1, %c0_i32 : i32, i32
  }
  func.func @transform_1(%arg0: i32, %arg1: i32) -> (i32, i32) {
    %c2_i32 = arith.constant 2 : i32
    %0 = arith.muli %arg0, %c2_i32 : i32
    %1 = arith.addi %0, %arg1 : i32
    %c0_i32 = arith.constant 0 : i32
    %c0_i32_0 = arith.constant 0 : i32
    return %1, %c0_i32 : i32, i32
  }
  func.func @transform_2(%arg0: i32, %arg1: i32) -> (i32, i32, i32, i32) {
    %c0_i32 = arith.constant 0 : i32
    %c0_i32_0 = arith.constant 0 : i32
    %c0_i32_1 = arith.constant 0 : i32
    %c0_i32_2 = arith.constant 0 : i32
    return %arg0, %c0_i32, %c0_i32_0, %c0_i32_1 : i32, i32, i32, i32
  }
}

</mosaic_0001>

<bundles_post_ra>
// kernel: tpu_custom_call.1
= control target key start
LH: loop header
LB: loop body
LE: loop exit
PB: predicated region body
PF: predicated region fallthrough
CT: control target
= control target key end

     0   :  { %7 = vsyncpa [#allocation3], 0  ;;  %s749_s0 = inlined_call_operand.hbm [shape: f32[16,128], index: 0, kind: input, shape index: {}]   ;;  %s750_s1 = inlined_call_operand.hbm [shape: f32[16,128], index: 1, kind: input, shape index: {}]   ;;  %s751_s2 = inlined_call_operand.hbm [shape: f32[1,4,8,128], index: 2, kind: output, shape index: {}]  }
   0x1   :  { %9 = vsyncpa [#allocation3 + $0x1], 0 }
   0x2   :  { %10 = vsyncpa [#allocation6], 0 }
   0x3   :  { %12 = vsyncpa [#allocation6 + $0x1], 0 }
   0x4   :  { %13 = vsyncpa [#allocation4], 0  ;;  %s608_s9 = smov 0   ;;  %s610_s10 = smov 0  }
   0x5   :  { %s612_s11 = smov 0   ;;  %s614_s12 = smov 0  }
   0x6   :  { %s616_s13 = smov 0   ;;  %s618_s14 = smov 0  }
   0x7 LB: > { %s358_s15 = sadd.s32 4294967295, %s585_s14   ;;  %s28_s16 = sadd.s32 1, %s581_s13  ;;  %s585_s14 = sphi %s618_s14, %s19_s14   ;;  %s581_s13 = sphi %s616_s13, %s761_s13   ;;  %s577_s12 = sphi %s614_s12, %s760_s12   ;;  %s573_s11 = sphi %s612_s11, %s759_s11   ;;  %s569_s10 = sphi %s610_s10, %s758_s10   ;;  %s565_s9 = sphi %s608_s9, %s757_s9  }
   0x8   : > { %p29_p0 = scmp.ge.s32.totalorder %s28_s16, 2  ;;  %s42_s17 = sadd.s32 1, %s573_s11 }
   0x9   : > { %p49_p1 = scmp.ne.s32.totalorder %s573_s11, %s569_s10  ;;  %p50_p2 = scmp.eq.s32.totalorder %s585_s14, 0 }
   0xa   : > { %s763_s16 = smov (%p29_p0, %s28_s16), 0  ;;  %p55_p4 = scmp.ne.s32.totalorder %s569_s10, %s565_s9 }
   0xb   : > { %p644_p3 = por %p50_p2, %p49_p1  ;;  %s39_s19 = ssub.s32 %s581_s13, %s763_s16 }
   0xc   : > { %p56_p5 = scmp.eq.s32.totalorder %s358_s15, 0  ;;  %p40_p6 = scmp.eq.s32.totalorder %s39_s19, 0 }
   0xd   : > { %p388_p8 = scmp.lt.s32.totalorder %s585_s14, 2  ;;  %s662_s22 = sand.u32 1, %s573_s11  }
   0xe   : > { %p653_p7 = por %p56_p5, %p55_p4  ;;  %s362_s23 = sshll.u32 %s581_s13, 7 }
   0xf   : > { %s659_s21 = scalar_select %p40_p6, %s573_s11, %s42_s17  }
  0x10   : > { %s361_s24 = sshll.u32 %s662_s22, 3  ;;  %s146_s27 = scalar_lea.hbm %s749_s0, %s362_s23 }
  0x11   : > { %s139_s28 = scalar_lea.vmem [#allocation2], %s361_s24  ;;  %p671_p9 = pnand %p388_p8, %p644_p3 }
  0x12   : > { %s148_s29 = sshll.u32 %s139_s28, 4  ;;  %p365_p10 = scmp.ge.s32.totalorder %s585_s14, 1  ;;  %s149_s29 = int_to_ptr.vmem [resolvable:$true] %s148_s29 }
  0x13   : > { %p173_p11 = scmp.lt.s32.totalorder %s585_s14, 3  ;;  %s136_s3 = scalar_lea.sflag [#allocation3], %s662_s22 }
  0x14   : > { %p449_p12 = pneg %p671_p9  ;;  %s460_s4 = scalar_lea.vmem %s149_s29, 128 }
  0x15   : > { %p461_p13 = scmp.ne.s32.totalorder %s149_s29, %s460_s4  ;;  %s587_s5 = smov [#allocation2]  }
  0x16   : > { %s465_s6 = sshll.u32 %s587_s5, 4  ;;  %s466_s6 = int_to_ptr.vmem [resolvable:$false] %s465_s6 }
  0x17   : > { %p463_p0 = pnand %p461_p13, %p449_p12  ;;  %s467_s7 = scalar_lea.vmem %s466_s6, 256 }
  0x18   : > { %p468_p2 = scmp.lt.s32.totalorder %s149_s29, %s466_s6  ;;  %p469_p3 = scmp.lt.s32.totalorder %s467_s7, %s460_s4 }
  0x19   : > { %p464_p1 = pneg %p463_p0 }
  0x1a   : > { %p470_p4 = por %p469_p3, %p468_p2 }
  0x1c   : > { %p471_p5 = pnand %p470_p4, %p464_p1 }
  0x1e   : > { %474 = shalt.err (!%p471_p5)
}
  0x1f   : > { %384 = dma.hbm_to_vmem [thread:$0]  (!%p671_p9), %s146_s27, 128, %s149_s29, %s136_s3  }
  0x20   : > { %p689_p6 = pnand %p365_p10, %p173_p11  ;;  %s166_s18 = scalar_lea.hbm %s750_s1, %s362_s23 }
  0x21   : > { %s159_s19 = scalar_lea.vmem [#allocation5], %s361_s24  ;;  %s156_s26 = scalar_lea.sflag [#allocation6], %s662_s22 }
  0x22   : > { %s168_s25 = sshll.u32 %s159_s19, 4  ;;  %s588_s27 = smov [#allocation5]   ;;  %s169_s25 = int_to_ptr.vmem [resolvable:$true] %s168_s25 }
  0x23   : > { %s488_s28 = scalar_lea.vmem %s169_s25, 128  ;;  %s493_s29 = sshll.u32 %s588_s27, 4  ;;  %s494_s29 = int_to_ptr.vmem [resolvable:$false] %s493_s29 }
  0x24   : > { %p489_p8 = scmp.ne.s32.totalorder %s169_s25, %s488_s28  ;;  %s495_s3 = scalar_lea.vmem %s494_s29, 256 }
  0x25   : > { %p496_p10 = scmp.lt.s32.totalorder %s169_s25, %s494_s29  ;;  %p497_p11 = scmp.lt.s32.totalorder %s495_s3, %s488_s28 }
  0x26   : > { %p491_p13 = pnand %p489_p8, %p449_p12 }
  0x27   : > { %p498_p1 = por %p497_p11, %p496_p10 }
  0x28   : > { %p492_p0 = pneg %p491_p13 }
  0x2a   : > { %p499_p2 = pnand %p498_p1, %p492_p0 }
  0x2c   : > { %502 = shalt.err (!%p499_p2)
}
  0x2d   : > { %387 = dma.hbm_to_vmem [thread:$0]  (!%p671_p9), %s166_s18, 128, %s169_s25, %s156_s26  }
  0x2e   : > { %177 = sbr.rel (%p689_p6) target bundleno = 101 (0x65), region = 28  ;;  %s179_s22 = sand.u32 (!%p689_p6), 1, %s569_s10  }
  0x2f   : > { %s366_s23 = sshll.u32 (!%p689_p6), %s179_s22, 3  ;;  %s180_s24 = scalar_lea.sflag (!%p689_p6), [#allocation3], %s179_s22 }
  0x30   : > { %s183_s4 = scalar_lea.vmem (!%p689_p6), [#allocation2], %s366_s23 }
  0x33   : > { %552 = dma.done.wait (%p653_p7), %s180_s24, 128  }
  0x34   : > { %554 = vsyncadd (%p653_p7), %s180_s24, 4294967168  ;;  %s189_s5 = scalar_lea.sflag [#allocation6], %s179_s22  ;;  %s192_s6 = scalar_lea.vmem [#allocation5], %s366_s23 }
  0x35   : > { %556 = dma.done.wait (%p653_p7), %s189_s5, 128  }
  0x36   : > { %558 = vsyncadd (%p653_p7), %s189_s5, 4294967168  ;;  %p368_p9 = scmp.ne.s32.totalorder %s577_s12, 0 }
  0x38   : > { %220 = sbr.rel (%p368_p9) target bundleno = 64 (0x40), region = 40 }
  0x3d   : > { %v589_v0 = vmov 0.0  }
  0x3e   : > { %221 = vst [vmem:[#allocation7] sm:$0xff] %v589_v0  ;;  %222 = vst [vmem:[#allocation7 + $0x8] sm:$0xff] %v589_v0 }
  0x3f   : > { %223 = vst [vmem:[#allocation7 + $0x10] sm:$0xff] %v589_v0  ;;  %224 = vst [vmem:[#allocation7 + $0x18] sm:$0xff] %v589_v0 }
  0x40 PF: > { %v225_v1 = vld [vmem:[%s192_s6] sm:$0xff]  ;;  %v226_v2 = vld [vmem:[%s183_s4] sm:$0xff]  ;;  %s590_s12 = smov [#allocation7]   ;;  %p716_p7 = scmp.eq.s32.totalorder %s358_s15, 1 }
  0x41   : > { %443 = vlog2.f32 %v226_v2  ;;  %v239_v4 = vmul.f32 %v226_v2, %v225_v1  ;;  %v230_v7 = vsub.f32 1.0, %v226_v2  ;;  %s267_s20 = sshll.u32 %s590_s12, 4  ;;  %s268_s20 = int_to_ptr.vmem [resolvable:$true] %s267_s20 }
  0x42   : > { %s503_s7 = scalar_lea.vmem %s268_s20, 512  ;;  %p510_p5 = scmp.lt.s32.totalorder %s268_s20, %s268_s20 }
  0x43   : > { %445 = vlog2.f32 %v230_v7  ;;  %p504_p12 = scmp.ne.s32.totalorder %s268_s20, %s503_s7  ;;  %p511_p6 = scmp.lt.s32.totalorder %s503_s7, %s503_s7 }
  0x45   : > { %v238_v3 = vld [vmem:[#allocation7] sm:$0xff]  ;;  %v244_v5 = vld [vmem:[#allocation7 + $0x8] sm:$0xff]  ;;  %p505_p3 = pnand %p504_p12, %p716_p7  ;;  %p512_p8 = por %p511_p6, %p510_p5 }
  0x46   : > { %v249_v6 = vld [vmem:[#allocation7 + $0x10] sm:$0xff]  ;;  %v246_v8 = vadd.f32 %v244_v5, %v226_v2  ;;  %v241_v10 = vadd.f32 %v239_v4, %v238_v3  ;;  %v254_v20 = vld [vmem:[#allocation7 + $0x18] sm:$0xff] }
  0x47   : > { %v251_v9 = vadd.f32 %v249_v6, %v225_v1  ;;  %p506_p4 = pneg %p505_p3 }
  0x48   : > { %247 = vst [vmem:[#allocation7 + $0x8] sm:$0xff] %v246_v8  ;;  %242 = vst [vmem:[#allocation7] sm:$0xff] %v241_v10 }
  0x49   : > { %252 = vst [vmem:[#allocation7 + $0x10] sm:$0xff] %v251_v9  ;;  %p513_p13 = pnand %p512_p8, %p506_p4 }
  0x4e   : > { %v444_v11 = vpop.eup %443 }
  0x4f   : > { %v228_v12 = vmul.f32 0.6931472, %v444_v11 }
  0x50   : > { %v446_v13 = vpop.eup %445 }
  0x51   : > { %v229_v14 = vmax.f32 %v228_v12, -100.0  ;;  %v232_v15 = vmul.f32 0.6931472, %v446_v13 }
  0x53   : > { %v233_v16 = vmax.f32 %v232_v15, -100.0 }
  0x55   : > { %v234_v17 = vsub.f32 %v229_v14, %v233_v16 }
  0x57   : > { %v235_v18 = vmul.f32 %v234_v17, %v225_v1 }
  0x59   : > { %v236_v19 = vadd.f32 %v235_v18, %v233_v16 }
  0x5b   : > { %v237_v21 = vsub.f32 0.0, %v236_v19 }
  0x5d   : > { %v256_v22 = vadd.f32 %v254_v20, %v237_v21 }
  0x5f   : > { %257 = vst [vmem:[#allocation7 + $0x18] sm:$0xff] %v256_v22 }
  0x60   : > { %516 = shalt.err (!%p513_p13)
}
  0x61   : > { %s591_s8 = smov 128   ;;  %s592_s15 = smov 8  }
  0x62   : > { %378 = dma.vmem_to_hbm [thread:$0]  (%p716_p7), %s268_s20, 512, %s751_s2, [#allocation4], %s591_s8, %s591_s8, %s592_s15  }
  0x63   : > { %560 = dma.done.wait (%p716_p7), [#allocation4], 512  }
  0x64   : > { %562 = vsyncadd (%p716_p7), [#allocation4], 4294966784 }
  0x65 PF: > { %s19_s14 = sadd.s32 1, %s585_s14   ;;  %s757_s9 = smov %s569_s10 }
  0x66   : > { %p16_p0 = scmp.ge.s32.totalorder %s19_s14, 4   ;;  %s758_s10 = smov %s573_s11 }
  0x67   : > { %s759_s11 = smov %s659_s21  ;;  %s760_s12 = smov %s581_s13 }
  0x68   : > { %s761_s13 = smov %s763_s16  ;;  %18 = sbr.rel (!%p16_p0) target bundleno = 7 (0x7), region = 86 }
  0x6d   :  { %283 = vsyncpa [#allocation3], 1 }
  0x6e   :  { %285 = vsyncpa [#allocation3 + $0x1], 1 }
  0x6f   :  { %286 = vsyncpa [#allocation6], 1 }
  0x70   :  { %288 = vsyncpa [#allocation6 + $0x1], 1 }
  0x71   :  { %289 = vsyncpa [#allocation4], 1 }
  0x72   :  { %291 = vsyncpa [#allocation4 + $0x1], 1 }

</bundles_post_ra>
